<compile_context>
chip_gen: v5e
topology: v5e:2x2
jax: 0.10.0
libtpu: 0.0.40
codegen_flags: <defaults>
</compile_context>

<pallas_src>
import jax
import jax.numpy as jnp
from jax.experimental import pallas as pl
from jax.experimental.pallas import tpu as pltpu


# ---------------------------------------------------------------------------
# Kernel: acc += dm_tile * (hcore_tile + 0.5 * veff_tile); reduce once at end.
# ---------------------------------------------------------------------------
def _energy_tot_kernel(dm_ref, hcore_ref, veff_ref, out_ref, acc_ref):
    s = pl.program_id(0)
    i = pl.program_id(1)
    j = pl.program_id(2)

    is_first = jnp.logical_and(jnp.logical_and(s == 0, i == 0), j == 0)
    is_last = jnp.logical_and(
        jnp.logical_and(s == pl.num_programs(0) - 1,
                        i == pl.num_programs(1) - 1),
        j == pl.num_programs(2) - 1)

    @pl.when(is_first)
    def _():
        acc_ref[...] = jnp.zeros_like(acc_ref)

    dm = dm_ref[...].astype(jnp.float32)       # (TM, TN)
    h = hcore_ref[...].astype(jnp.float32)     # (TM, TN)
    v = veff_ref[...].astype(jnp.float32)      # (TM, TN)
    acc_ref[...] += dm * (h + 0.5 * v)

    @pl.when(is_last)
    def _():
        total = jnp.sum(acc_ref[...])          # one cross-lane reduce, once
        out_ref[...] = total.reshape(1, 1).astype(out_ref.dtype)


# ---------------------------------------------------------------------------
# Tile-size helper: (8,128)-aligned tiles that divide nao, full-axis fallback.
# ---------------------------------------------------------------------------
def _pick_tile(n, pref, align):
    if n <= pref:
        return n                      # whole axis as one block (always legal)
    t = (pref // align) * align
    while t >= align:
        if n % t == 0:
            return t
        t -= align
    return n                          # fallback: un-tiled axis


# ---------------------------------------------------------------------------
# Wrapper
# ---------------------------------------------------------------------------
def energy_tot(dm, hcore, veff):
    """dm: (nao,nao) or (ns,nao,nao); hcore: (nao,nao); veff: same shape as dm.
    Returns shape (1,) total energy, matching the torch module."""
    if dm.ndim == 2:
        dm3 = dm[None]
        veff3 = veff[None]
    else:
        dm3 = dm
        veff3 = veff
    ns, nao, _ = dm3.shape

    tm = _pick_tile(nao, 256, 8)      # sublane-aligned row tile
    tn = _pick_tile(nao, 512, 128)    # lane-aligned col tile
    grid = (ns, nao // tm, nao // tn)

    out = pl.pallas_call(
        _energy_tot_kernel,
        out_shape=jax.ShapeDtypeStruct((1, 1), jnp.float32),
        grid=grid,
        in_specs=[
            pl.BlockSpec((pl.Squeezed(), tm, tn), lambda s, i, j: (s, i, j)),
            pl.BlockSpec((tm, tn), lambda s, i, j: (i, j)),
            pl.BlockSpec((pl.Squeezed(), tm, tn), lambda s, i, j: (s, i, j)),
        ],
        out_specs=pl.BlockSpec((1, 1), lambda s, i, j: (0, 0)),
        scratch_shapes=[pltpu.VMEM((tm, tn), jnp.float32)],
        compiler_params=pltpu.CompilerParams(
            # output scalar is shared by every grid step -> sequential grid
            dimension_semantics=("arbitrary", "arbitrary", "arbitrary"),
            vmem_limit_bytes=64 * 1024 * 1024,
        ),
    )(dm3, hcore, veff3)

    return out.reshape(1).astype(dm.dtype)


# ---------------------------------------------------------------------------
# Pure-JAX reference (mirrors the PyTorch module)
# ---------------------------------------------------------------------------
def _ref_energy_tot(dm, hcore, veff):
    e1 = jnp.einsum('...ij,ij', dm, hcore)
    e2 = jnp.einsum('...ij,...ij', dm, veff)
    return jnp.sum(e1 + 0.5 * e2).reshape(1)


if __name__ == "__main__":
    key = jax.random.PRNGKey(0)
    k1, k2, k3, k4, k5, k6 = jax.random.split(key, 6)

    # ---- spin-unrestricted small case (ns=2, nao=16) -----------------------
    ns, nao = 2, 16
    dm = jax.random.normal(k1, (ns, nao, nao), dtype=jnp.float32)
    hcore = jax.random.normal(k2, (nao, nao), dtype=jnp.float32)
    veff = jax.random.normal(k3, (ns, nao, nao), dtype=jnp.float32)

    out = jax.block_until_ready(energy_tot(dm, hcore, veff))
    ref = _ref_energy_tot(dm, hcore, veff)
    assert out.shape == (1,)
    assert jnp.allclose(out, ref, rtol=1e-4, atol=1e-3), (out, ref)

    # ---- restricted (2-D dm) case ------------------------------------------
    dm_r = jax.random.normal(k4, (nao, nao), dtype=jnp.float32)
    veff_r = jax.random.normal(k5, (nao, nao), dtype=jnp.float32)
    out_r = jax.block_until_ready(energy_tot(dm_r, hcore, veff_r))
    ref_r = _ref_energy_tot(dm_r, hcore, veff_r)
    assert out_r.shape == (1,)
    assert jnp.allclose(out_r, ref_r, rtol=1e-4, atol=1e-3), (out_r, ref_r)

    # ---- larger case exercising the tiled multi-step grid + accumulator ----
    nao_big = 512
    dm_b = jax.random.normal(k6, (ns, nao_big, nao_big), dtype=jnp.float32)
    hcore_b = jax.random.normal(k2, (nao_big, nao_big), dtype=jnp.float32)
    veff_b = jax.random.normal(k3, (ns, nao_big, nao_big), dtype=jnp.float32)
    out_b = jax.block_until_ready(energy_tot(dm_b, hcore_b, veff_b))
    ref_b = _ref_energy_tot(dm_b, hcore_b, veff_b)
    assert out_b.shape == (1,)
    assert jnp.allclose(out_b, ref_b, rtol=1e-3, atol=1e-1), (out_b, ref_b)

    print("KERNEL_OK")
</pallas_src>

<mosaic_0001>
module attributes {stable_mosaic.version = 11 : i64} {
  func.func @_energy_tot_kernel(%arg0: i32, %arg1: i32, %arg2: i32, %arg3: memref<1x16x16xf32, #tpu.memory_space<vmem>>, %arg4: memref<16x16xf32, #tpu.memory_space<vmem>>, %arg5: memref<1x16x16xf32, #tpu.memory_space<vmem>>, %arg6: memref<1x1xf32, #tpu.memory_space<vmem>>, %arg7: memref<16x16xf32, #tpu.memory_space<vmem>>) attributes {dimension_semantics = [#tpu.dimension_semantics<arbitrary>, #tpu.dimension_semantics<arbitrary>, #tpu.dimension_semantics<arbitrary>], iteration_bounds = array<i64: 2, 1, 1>, scalar_prefetch = 0 : i64, scratch_operands = 1 : i64, tpu.core_type = #tpu.core_type<tc>, window_params = [{transform_indices = @transform_0, window_bounds = array<i64: 1, 16, 16>}, {transform_indices = @transform_1, window_bounds = array<i64: 16, 16>}, {transform_indices = @transform_2, window_bounds = array<i64: 1, 16, 16>}, {pipeline_mode = #tpu.pipeline_mode<synchronous>, transform_indices = @transform_3, window_bounds = array<i64: 1, 1>}]} {
    %c0_i32 = arith.constant 0 : i32
    %0 = arith.cmpi eq, %arg0, %c0_i32 : i32
    %c0_i32_0 = arith.constant 0 : i32
    %1 = arith.cmpi eq, %arg1, %c0_i32_0 : i32
    %2 = arith.andi %0, %1 : i1
    %c0_i32_1 = arith.constant 0 : i32
    %3 = arith.cmpi eq, %arg2, %c0_i32_1 : i32
    %4 = arith.andi %2, %3 : i1
    %c1_i32 = arith.constant 1 : i32
    %5 = arith.cmpi eq, %arg0, %c1_i32 : i32
    %c0_i32_2 = arith.constant 0 : i32
    %6 = arith.cmpi eq, %arg1, %c0_i32_2 : i32
    %7 = arith.andi %5, %6 : i1
    %c0_i32_3 = arith.constant 0 : i32
    %8 = arith.cmpi eq, %arg2, %c0_i32_3 : i32
    %9 = arith.andi %7, %8 : i1
    %10 = arith.extui %4 : i1 to i32
    %c0_i32_4 = arith.constant 0 : i32
    %11 = arith.cmpi ne, %10, %c0_i32_4 : i32
    scf.if %11 {
      %cst_17 = arith.constant 0.000000e+00 : f32
      %26 = vector.broadcast %cst_17 : f32 to vector<16x16xf32>
      %c0_18 = arith.constant 0 : index
      %c0_19 = arith.constant 0 : index
      %27 = vector.load %arg7[%c0_18, %c0_19] : memref<16x16xf32, #tpu.memory_space<vmem>>, vector<16x16xf32>
      tpu.vector_store %arg7[%c0_18, %c0_19], %26 {strides = array<i32>} : memref<16x16xf32, #tpu.memory_space<vmem>>, vector<16x16xf32>,
    } else {
    }
    %c0 = arith.constant 0 : index
    %c0_5 = arith.constant 0 : index
    %c0_6 = arith.constant 0 : index
    %12 = vector.load %arg3[%c0, %c0_5, %c0_6] : memref<1x16x16xf32, #tpu.memory_space<vmem>>, vector<1x16x16xf32>
    %13 = vector.shape_cast %12 : vector<1x16x16xf32> to vector<16x16xf32>
    %c0_7 = arith.constant 0 : index
    %c0_8 = arith.constant 0 : index
    %14 = vector.load %arg4[%c0_7, %c0_8] : memref<16x16xf32, #tpu.memory_space<vmem>>, vector<16x16xf32>
    %c0_9 = arith.constant 0 : index
    %c0_10 = arith.constant 0 : index
    %c0_11 = arith.constant 0 : index
    %15 = vector.load %arg5[%c0_9, %c0_10, %c0_11] : memref<1x16x16xf32, #tpu.memory_space<vmem>>, vector<1x16x16xf32>
    %16 = vector.shape_cast %15 : vector<1x16x16xf32> to vector<16x16xf32>
    %c0_12 = arith.constant 0 : index
    %c0_13 = arith.constant 0 : index
    %17 = vector.load %arg7[%c0_12, %c0_13] : memref<16x16xf32, #tpu.memory_space<vmem>>, vector<16x16xf32>
    %cst = arith.constant 5.000000e-01 : f32
    %18 = vector.broadcast %cst : f32 to vector<16x16xf32>
    %19 = arith.mulf %18, %16 : vector<16x16xf32>
    %20 = arith.addf %14, %19 : vector<16x16xf32>
    %21 = arith.mulf %13, %20 : vector<16x16xf32>
    %22 = arith.addf %17, %21 : vector<16x16xf32>
    %c0_14 = arith.constant 0 : index
    %c0_15 = arith.constant 0 : index
    %23 = vector.load %arg7[%c0_14, %c0_15] : memref<16x16xf32, #tpu.memory_space<vmem>>, vector<16x16xf32>
    tpu.vector_store %arg7[%c0_14, %c0_15], %22 {strides = array<i32>} : memref<16x16xf32, #tpu.memory_space<vmem>>, vector<16x16xf32>,
    %24 = arith.extui %9 : i1 to i32
    %c0_i32_16 = arith.constant 0 : i32
    %25 = arith.cmpi ne, %24, %c0_i32_16 : i32
    scf.if %25 {
      %c0_17 = arith.constant 0 : index
      %c0_18 = arith.constant 0 : index
      %26 = vector.load %arg7[%c0_17, %c0_18] : memref<16x16xf32, #tpu.memory_space<vmem>>, vector<16x16xf32>
      %27 = vector.shape_cast %26 : vector<16x16xf32> to vector<1x16x16xf32>
      %cst_19 = arith.constant dense<0.000000e+00> : vector<1xf32>
      %28 = vector.multi_reduction <add>, %27, %cst_19 [1, 2] : vector<1x16x16xf32> to vector<1xf32>
      %29 = vector.shape_cast %28 : vector<1xf32> to vector<1x1x1xf32>
      %30 = vector.extract %29[0, 0, 0] : f32 from vector<1x1x1xf32>
      %31 = vector.broadcast %30 : f32 to vector<1x1xf32>
      %c0_20 = arith.constant 0 : index
      %c0_21 = arith.constant 0 : index
      %32 = vector.load %arg6[%c0_20, %c0_21] : memref<1x1xf32, #tpu.memory_space<vmem>>, vector<1x1xf32>
      tpu.vector_store %arg6[%c0_20, %c0_21], %31 {strides = array<i32>} : memref<1x1xf32, #tpu.memory_space<vmem>>, vector<1x1xf32>,
    } else {
    }
    return
  }
  func.func @transform_0(%arg0: i32, %arg1: i32, %arg2: i32) -> (i32, i32, i32) {
    %c0_i32 = arith.constant 0 : i32
    return %arg0, %arg1, %arg2 : i32, i32, i32
  }
  func.func @transform_1(%arg0: i32, %arg1: i32, %arg2: i32) -> (i32, i32) {
    %c0_i32 = arith.constant 0 : i32
    return %arg1, %arg2 : i32, i32
  }
  func.func @transform_2(%arg0: i32, %arg1: i32, %arg2: i32) -> (i32, i32, i32) {
    %c0_i32 = arith.constant 0 : i32
    return %arg0, %arg1, %arg2 : i32, i32, i32
  }
  func.func @transform_3(%arg0: i32, %arg1: i32, %arg2: i32) -> (i32, i32) {
    %c0_i32 = arith.constant 0 : i32
    %c0_i32_0 = arith.constant 0 : i32
    %c0_i32_1 = arith.constant 0 : i32
    return %c0_i32, %c0_i32_0 : i32, i32
  }
}

</mosaic_0001>

<bundles_post_ra>
// kernel: tpu_custom_call.1
= control target key start
LH: loop header
LB: loop body
LE: loop exit
PB: predicated region body
PF: predicated region fallthrough
CT: control target
= control target key end

     0   :  { %8 = vsyncpa [#allocation4], 0  ;;  %s893_s0 = inlined_call_operand.hbm [shape: f32[2,16,16], index: 0, kind: input, shape index: {}]   ;;  %s894_s1 = inlined_call_operand.hbm [shape: f32[16,16], index: 1, kind: input, shape index: {}]   ;;  %s895_s2 = inlined_call_operand.hbm [shape: f32[2,16,16], index: 2, kind: input, shape index: {}]   ;;  %s896_s3 = inlined_call_operand.hbm [shape: f32[1,1], index: 3, kind: output, shape index: {}]  }
   0x1   :  { %10 = vsyncpa [#allocation4 + $0x1], 0 }
   0x2   :  { %11 = vsyncpa [#allocation7], 0 }
   0x3   :  { %12 = vsyncpa [#allocation5], 0  ;;  %s768_s12 = smov 0   ;;  %s770_s13 = smov 0  }
   0x4   :  { %s772_s14 = smov 0   ;;  %s774_s15 = smov 0  }
   0x5   :  { %s776_s16 = smov 0   ;;  %s778_s17 = smov 0  }
   0x6 LB: > { %s37_s18 = sadd.s32 1, %s737_s16  ;;  %s48_s19 = sadd.s32 1, %s729_s14  ;;  %s741_s17 = sphi %s778_s17, %s18_s17   ;;  %s737_s16 = sphi %s776_s16, %s904_s16   ;;  %s733_s15 = sphi %s774_s15, %s903_s15   ;;  %s729_s14 = sphi %s772_s14, %s902_s14   ;;  %s725_s13 = sphi %s770_s13, %s901_s13   ;;  %s721_s12 = sphi %s768_s12, %s900_s12  }
   0x7   : > { %p39_p0 = scmp.ge.s32.totalorder %s37_s18, 2  ;;  %p55_p1 = scmp.ne.s32.totalorder %s729_s14, %s725_s13 }
   0x8   : > { %p56_p2 = scmp.eq.s32.totalorder %s741_s17, 0  ;;  %p504_p5 = scmp.lt.s32.totalorder %s741_s17, 2 }
   0x9   : > { %s906_s18 = smov (%p39_p0, %s37_s18), 0  ;;  %s182_s22 = sand.u32 1, %s741_s17  }
   0xa   : > { %p805_p3 = por %p56_p2, %p55_p1  ;;  %s41_s21 = ssub.s32 %s737_s16, %s906_s18 }
   0xb   : > { %p46_p4 = scmp.eq.s32.totalorder %s41_s21, 0  ;;  %s184_s23 = sand.u32 1, %s729_s14  }
   0xc   : > { %s454_s25 = sshll.u32 %s184_s23, 4  ;;  %s472_s26 = sshll.u32 %s737_s16, 4 }
   0xd   : > { %s815_s24 = scalar_select %p46_p4, %s729_s14, %s48_s19  }
   0xe   : > { %s194_s29 = scalar_lea.hbm %s893_s0, %s472_s26  ;;  %s186_s30 = scalar_lea.vmem [#allocation3], %s454_s25 }
   0xf   : > { %s197_s4 = sshll.u32 %s186_s30, 4  ;;  %s195_s5 = sshll.u32 %s194_s29, 4  ;;  %s198_s4 = int_to_ptr.vmem [resolvable:$true] %s197_s4  ;;  %s196_s5 = int_to_ptr.hbm [resolvable:$true] %s195_s5 }
  0x10   : > { %p823_p6 = pnand %p504_p5, %p805_p3  ;;  %s219_s9 = scalar_lea.hbm %s895_s2, %s472_s26 }
  0x11   : > { %s220_s10 = sshll.u32 %s219_s9, 4  ;;  %s183_s11 = scalar_lea.sflag [#allocation4], %s182_s22  ;;  %s221_s10 = int_to_ptr.hbm [resolvable:$true] %s220_s10 }
  0x12   : > { %s743_s19 = smov 128   ;;  %s744_s21 = smov 8  }
  0x13   : > { %499 = dma.hbm_to_vmem [thread:$0]  (!%p823_p6), %s196_s5, 256, %s198_s4, %s183_s11, %s743_s19, %s743_s19, %s744_s21  }
  0x14   : > { %s211_s23 = scalar_lea.vmem [#allocation8], %s454_s25  ;;  %s833_s20 = sadd.s32 4294967295, %s741_s17  }
  0x15   : > { %s222_s27 = sshll.u32 %s211_s23, 4  ;;  %p61_p7 = scmp.ne.s32.totalorder %s725_s13, %s721_s12  ;;  %s223_s27 = int_to_ptr.vmem [resolvable:$true] %s222_s27 }
  0x16   : > { %p62_p8 = scmp.eq.s32.totalorder %s833_s20, 0  ;;  %p451_p9 = scmp.ge.s32.totalorder %s741_s17, 1 }
  0x17   : > { %p151_p10 = scmp.lt.s32.totalorder %s741_s17, 3  ;;  %s166_s25 = sshll.u32 %s894_s1, 4  ;;  %s167_s25 = int_to_ptr.hbm [resolvable:$true] %s166_s25 }
  0x18   : > { %p842_p11 = por %p62_p8, %p61_p7  ;;  %s745_s29 = smov [#allocation6]  }
  0x19   : > { %p152_p12 = pnand %p451_p9, %p151_p10  ;;  %s168_s30 = sshll.u32 %s745_s29, 4  ;;  %s169_s30 = int_to_ptr.vmem [resolvable:$true] %s168_s30 }
  0x1a   : > { %502 = dma.hbm_to_vmem [thread:$0]  (!%p823_p6), %s221_s10, 256, %s223_s27, %s183_s11, %s743_s19, %s743_s19, %s744_s21  }
  0x1b   : > { %p492_p13 = pneg %p152_p12  ;;  %234 = sbr.rel (%p152_p12) target bundleno = 252 (0xfc), region = 32 }
  0x1c   : > { %s236_s12 = sand.u32 (!%p152_p12), 1, %s833_s20   ;;  %s238_s4 = sand.u32 (!%p152_p12), 1, %s725_s13  }
  0x1d   : > { %p493_p0 = pnand %p492_p13, %p62_p8  ;;  %s461_s5 = sshll.u32 (!%p152_p12), %s238_s4, 4 }
  0x1e   : > { %s237_s7 = scalar_lea.sflag (!%p152_p12), [#allocation4], %s236_s12  ;;  %s240_s8 = scalar_lea.vmem (!%p152_p12), [#allocation3], %s461_s5 }
  0x1f   : > { %495 = dma.hbm_to_vmem [thread:$0]  (!%p493_p0), %s167_s25, 256, %s169_s30, [#allocation7], %s743_s19, %s743_s19, %s744_s21  }
  0x20   : > { %704 = dma.done.wait (%p842_p11), %s237_s7, 256  }
  0x21   : > { %706 = vsyncadd (%p842_p11), %s237_s7, 4294967040 }
  0x22   : > { %708 = dma.done.wait (%p62_p8), [#allocation7], 256  }
  0x23   : > { %710 = vsyncadd (%p62_p8), [#allocation7], 4294967040  ;;  %s255_s6 = scalar_lea.vmem [#allocation8], %s461_s5 }
  0x24   : > { %712 = dma.done.wait (%p842_p11), %s237_s7, 256  }
  0x25   : > { %714 = vsyncadd (%p842_p11), %s237_s7, 4294967040  ;;  %p282_p1 = scmp.eq.s32.totalorder %s733_s15, 0  ;;  %p289_p2 = scmp.eq.s32.totalorder %s733_s15, 1 }
  0x26   : > { %vm296_vm0 = vcmask (%p282_p1), 130048   ;;  %v746_v0 = vmov (%p282_p1), 0.0  }
  0x27   : > { %295 = sbr.rel (!%p282_p1) target bundleno = 44 (0x2c), region = 48  ;;  %297 = vst.msk [vmem:[#allocation2] sm:$0xff] (%p282_p1), %vm296_vm0, %v746_v0 }
  0x28   : > { %298 = vst.msk [vmem:[#allocation2 + $0x8] sm:$0xff] (%p282_p1), %vm296_vm0, %v746_v0 }
  0x2c PF: > { %v301_v1 = vld [vmem:[#allocation6] sm:$0xff]  ;;  %v302_v5 = vld [vmem:[#allocation6 + $0x8] sm:$0xff]  ;;  %vm315_vm1 = vcmask 130048   ;;  %vm335_vm2 = vcmask (%p289_p2), 0  }
  0x2d   : > { %v303_v2 = vld [vmem:[%s255_s6] sm:$0xff]  ;;  %v299_v4 = vld [vmem:[%s240_s8] sm:$0xff]  ;;  %v304_v6 = vld [vmem:[%s255_s6 + $0x8] sm:$0xff] }
  0x2e   : > { %v307_v3 = vmul.f32 0.5, %v303_v2  ;;  %v308_v8 = vmul.f32 0.5, %v304_v6  ;;  %v305_v9 = vld [vmem:[#allocation2] sm:$0xff]  ;;  %v300_v10 = vld [vmem:[%s240_s8 + $0x8] sm:$0xff] }
  0x2f   : > { %v306_v13 = vld [vmem:[#allocation2 + $0x8] sm:$0xff] }
  0x30   : > { %v309_v7 = vadd.f32 %v307_v3, %v301_v1  ;;  %v310_v12 = vadd.f32 %v308_v8, %v302_v5 }
  0x32   : > { %v311_v11 = vmul.f32 %v309_v7, %v299_v4  ;;  %v312_v15 = vmul.f32 %v310_v12, %v300_v10 }
  0x33   : > { %319 = sbr.rel (!%p289_p2) target bundleno = 246 (0xf6), region = 52 }
  0x34   : > { %v313_v14 = vadd.f32 %v311_v11, %v305_v9  ;;  %v314_v16 = vadd.f32 %v312_v15, %v306_v13 }
  0x36   : > { %316 = vst.msk [vmem:[#allocation2] sm:$0xff] %vm315_vm1, %v313_v14 }
  0x37   : > { %317 = vst.msk [vmem:[#allocation2 + $0x8] sm:$0xff] %vm315_vm1, %v314_v16 }
  0x3d   : > { %v320_v17 = vld [vmem:[#allocation2] sm:$0xff] }
  0x3e   : > { %v321_v18 = vld [vmem:[#allocation2 + $0x8] sm:$0xff]  ;;  %v322_v19 = vsel %vm315_vm1, %v320_v17, 0.0 }
  0x3f   : > { %v323_v20 = vsel %vm315_vm1, %v321_v18, 0.0 }
  0x40   : > { %v324_v21 = vadd.f32 %v323_v20, %v322_v19 }
  0x42   : > { %325 = vadd.xlane.f32.xlu0 %v324_v21 }
  0xb5   : > { %v326_v22 = vpop.xlane.xlu0 %325 }
  0xb6   : > { %v327_v23 = vrot.slane %v326_v22, 4 }
  0xb8   : > { %v328_v24 = vadd.f32 %v327_v23, %v326_v22 }
  0xba   : > { %v329_v25 = vrot.slane %v328_v24, 2 }
  0xbc   : > { %v330_v26 = vadd.f32 %v329_v25, %v328_v24 }
  0xbe   : > { %v331_v27 = vrot.slane %v330_v26, 1 }
  0xc0   : > { %v332_v28 = vadd.f32 %v331_v27, %v330_v26 }
  0xc2   : > { %478 = vpush %v332_v28 }
  0xf3   : > { %s479_s9 = spop %478 }
  0xf4   : > { %v334_v29 = vstv %s479_s9 }
  0xf5   : > { %336 = vst.msk [vmem:[#allocation9] sm:$0x1] %vm335_vm2, %v334_v29 }
  0xf6 PF: > { %p506_p3 = scmp.eq.s32.totalorder %s833_s20, 1  ;;  %s345_s11 = sshll.u32 %s896_s3, 4  ;;  %s346_s11 = int_to_ptr.hbm [resolvable:$true] %s345_s11 }
  0xf7   : > { %s747_s19 = smov [#allocation9]  }
  0xf8   : > { %s343_s21 = sshll.u32 %s747_s19, 4  ;;  %s344_s21 = int_to_ptr.vmem [resolvable:$true] %s343_s21 }
  0xf9   : > { %489 = dma.vmem_to_hbm [thread:$0]  (%p506_p3), %s344_s21, 16, %s346_s11, [#allocation5]  }
  0xfa   : > { %716 = dma.done.wait (%p506_p3), [#allocation5], 16  }
  0xfb   : > { %718 = vsyncadd (%p506_p3), [#allocation5], 4294967280 }
  0xfc PF: > { %s18_s17 = sadd.s32 1, %s741_s17   ;;  %s900_s12 = smov %s725_s13 }
  0xfd   : > { %p15_p4 = scmp.ge.s32.totalorder %s18_s17, 4   ;;  %s901_s13 = smov %s729_s14 }
  0xfe   : > { %s902_s14 = smov %s815_s24  ;;  %s903_s15 = smov %s737_s16 }
  0xff   : > { %s904_s16 = smov %s906_s18  ;;  %17 = sbr.rel (!%p15_p4) target bundleno = 6 (0x6), region = 93 }
 0x104   :  { %359 = vsyncpa [#allocation4], 1 }
 0x105   :  { %361 = vsyncpa [#allocation4 + $0x1], 1 }
 0x106   :  { %362 = vsyncpa [#allocation7], 1 }
 0x107   :  { %363 = vsyncpa [#allocation5], 1 }
 0x108   :  { %365 = vsyncpa [#allocation5 + $0x1], 1 }

</bundles_post_ra>
